<compile_context>
chip_gen: v5e
topology: v5e:2x2
jax: 0.10.0
libtpu: 0.0.40
codegen_flags: <defaults>
</compile_context>

<pallas_src>
import math

import jax
import jax.numpy as jnp
from jax.experimental import pallas as pl
from jax.experimental.pallas import tpu as pltpu


def get_embedding_table(max_seq_len, embedding_dim, padding_idx=None, rel_pos_init=0):
    """Sinusoidal embedding table, matching the PyTorch get_embedding()."""
    num_embeddings = max_seq_len
    half_dim = embedding_dim // 2
    scale = math.log(10000) / (half_dim - 1)
    inv_freq = jnp.exp(jnp.arange(half_dim, dtype=jnp.float32) * -scale)
    if rel_pos_init == 0:
        pos = jnp.arange(num_embeddings, dtype=jnp.float32)[:, None] * inv_freq[None, :]
    else:
        pos = (
            jnp.arange(-max_seq_len, max_seq_len + 1, dtype=jnp.float32)[:, None]
            * inv_freq[None, :]
        )
    emb = jnp.concatenate([jnp.sin(pos), jnp.cos(pos)], axis=1).reshape(num_embeddings, -1)
    if embedding_dim % 2 == 1:
        emb = jnp.concatenate([emb, jnp.zeros((num_embeddings, 1), jnp.float32)], axis=1)
    if padding_idx is not None:
        emb = emb.at[padding_idx, :].set(0.0)
    return emb


def _round_up(x, m):
    return ((x + m - 1) // m) * m


def precompute_fused_table(emb_table, weight, bias):
    """Fold the Linear (PyTorch (out, in) weight) into the frozen table.

    Weight/bias are static across calls, so compute this once and pass it to
    the wrapper instead of re-fusing per invocation.
    """
    return (jnp.einsum("ui,oi->uo", emb_table, weight) + bias[None, :]).astype(jnp.float32)


def _embed_linear_relu_kernel(idx_ref, tbl_ref, o_ref):
    # idx_ref: (TNR, k) int32  -- k tokens packed per output row (this tile)
    # tbl_ref: (U, H)  f32     -- fused table (emb @ W^T + b), VMEM-resident
    # o_ref  : (TNR, k*H) f32  -- lane-dense output tile (k*H multiple of 128
    #                             whenever H < 128 allows it)
    tnr, k = idx_ref.shape
    u, h = tbl_ref.shape
    tbl = tbl_ref[...]
    idx_all = idx_ref[...]
    # One-hot row selection on the (otherwise idle) MXU instead of a dynamic
    # gather: no O(U) VALU select chain, no OOB reads, no clamp needed
    # (out-of-range / padded indices yield an all-zero row -> 0 after ReLU).
    col = jax.lax.broadcasted_iota(jnp.int32, (tnr, u), 1)
    for g in range(k):  # static unroll; k = 128 // gcd(H, 128) is small
        onehot = (col == idx_all[:, g : g + 1]).astype(tbl.dtype)          # (TNR, U)
        rows_g = jnp.dot(onehot, tbl, preferred_element_type=jnp.float32)  # (TNR, H)
        # TODO(synk): Dropout(p=0.2) is identity in eval mode; training-mode dropout
        # (pltpu.prng_*) intentionally omitted for deterministic inference semantics.
        # TODO(synk): if the consumer tolerates bf16, cast here and make the output
        # bf16 to halve write traffic (biggest relative win on v5e's HBM bandwidth).
        o_ref[:, g * h : (g + 1) * h] = jnp.maximum(rows_g, 0.0).astype(o_ref.dtype)


def _derive_vmem_limit_bytes(tnr, k, u, h):
    """Size the scoped VMEM limit from the actual buffers instead of a flat 48 MiB."""
    def tile_bytes(rows, cols, itemsize=4):
        return _round_up(rows, 8) * _round_up(cols, 128) * itemsize

    need = (
        2 * tile_bytes(tnr, k * h)   # double-buffered output tiles
        + 2 * tile_bytes(tnr, k)     # double-buffered index tiles
        + 2 * tile_bytes(u, h)       # resident fused table (default 2 buffers)
        + 4 * 1024 * 1024            # slack for Mosaic internal scratch
    )
    # Never shrink below the scoped default; cap to keep headroom within v7x's
    # 64 MiB physical VMEM (for production U*H, shrink TN if `need` exceeds this).
    return min(max(need, 32 * 1024 * 1024), 56 * 1024 * 1024)


def utterance_aware_pos_embedding(
    utter_pos,
    mask,
    emb_table=None,
    weight=None,
    bias=None,
    *,
    fused_table=None,
    target_tile_bytes=2 * 1024 * 1024,
):
    """utter_pos: (B, S) int indices; mask accepted but unused (matches PyTorch)."""
    del mask
    if fused_table is None:
        fused_table = precompute_fused_table(emb_table, weight, bias)
    U, H = fused_table.shape
    B, S = utter_pos.shape
    N = B * S

    # Lane packing: when H < 128, pack k tokens per output row so the output
    # tile's last dim is a multiple of 128 -> lane-dense stores and writeback.
    if H < 128:
        k = 128 // math.gcd(H, 128)
        if k > 16:  # awkward H (odd etc.): fall back to unpacked layout
            k = 1
    else:
        k = 1

    # Adaptive token tile: target ~2 MiB output tiles (bandwidth-bound sweet
    # spot), clamped so tiny problems don't over-pad and large H fits VMEM.
    tn_target = target_tile_bytes // (4 * H)
    tn_target = _round_up(max(512, min(tn_target, 8192)), 8 * k)
    TN = min(tn_target, _round_up(N, 8 * k))     # tokens per tile
    N_pad = _round_up(N, TN)
    TNR = TN // k                                # packed output rows per tile

    idx = utter_pos.reshape(N).astype(jnp.int32)
    idx = jnp.pad(idx, (0, N_pad - N)).reshape(N_pad // k, k)

    # TODO(synk): for production-sized U*H on v7x, the resident table could be
    # single-buffered via pipeline_mode=pl.Buffered(1) to halve its VMEM cost.
    out = pl.pallas_call(
        _embed_linear_relu_kernel,
        out_shape=jax.ShapeDtypeStruct((N_pad // k, k * H), jnp.float32),
        grid=(N_pad // TN,),
        in_specs=[
            pl.BlockSpec((TNR, k), lambda i: (i, 0)),   # packed per-tile indices
            pl.BlockSpec((U, H), lambda i: (0, 0)),     # fused table, VMEM-resident
        ],
        out_specs=pl.BlockSpec((TNR, k * H), lambda i: (i, 0)),
        compiler_params=pltpu.CompilerParams(
            dimension_semantics=("parallel",),          # shard tiles on v7x's 2 TCs
            vmem_limit_bytes=_derive_vmem_limit_bytes(TNR, k, U, H),
        ),
    )(idx, fused_table)

    # (N_pad//k, k*H) and (N_pad, H) share the same row-major layout: free reshape.
    return out.reshape(N_pad, H)[:N].reshape(B, S, H)


if __name__ == "__main__":
    def run_case(key, B, S, max_utter_nums, hidden):
        k_idx, k_w, k_b = jax.random.split(key, 3)
        utter_pos = jax.random.randint(k_idx, (B, S), 0, max_utter_nums, dtype=jnp.int32)
        mask = jnp.ones((B, S), dtype=jnp.float32)  # unused by the forward

        emb_table = get_embedding_table(max_utter_nums, hidden)
        # Deterministic Linear params (hidden -> hidden), PyTorch convention (out, in).
        bound = 1.0 / math.sqrt(hidden)
        weight = jax.random.uniform(k_w, (hidden, hidden), jnp.float32, -bound, bound)
        bias = jax.random.uniform(k_b, (hidden,), jnp.float32, -bound, bound)

        # Hoisted out of the per-call hot path (weights are static).
        fused = precompute_fused_table(emb_table, weight, bias)

        out = utterance_aware_pos_embedding(utter_pos, mask, fused_table=fused)
        out = jax.block_until_ready(out)

        # Pure-JAX reference check.
        ref = jnp.maximum(emb_table[utter_pos] @ weight.T + bias, 0.0)
        assert out.shape == (B, S, hidden)
        assert jnp.allclose(out, ref, atol=1e-4, rtol=1e-4), "mismatch vs reference"

    key = jax.random.PRNGKey(0)
    k1, k2 = jax.random.split(key)
    # Small shapes per spec: batch=2, seq=8, max_utter_nums=16, hidden=32
    run_case(k1, B=2, S=8, max_utter_nums=16, hidden=32)    # packed path (k = 4)
    run_case(k2, B=2, S=8, max_utter_nums=24, hidden=128)   # lane-dense path (k = 1)

    print("KERNEL_OK")
</pallas_src>

<mosaic_0001>
module attributes {stable_mosaic.version = 11 : i64} {
  func.func @_embed_linear_relu_kernel(%arg0: i32, %arg1: memref<8x4xi32, #tpu.memory_space<vmem>>, %arg2: memref<16x32xf32, #tpu.memory_space<vmem>>, %arg3: memref<8x128xf32, #tpu.memory_space<vmem>>) attributes {dimension_semantics = [#tpu.dimension_semantics<parallel>], iteration_bounds = array<i64: 1>, scalar_prefetch = 0 : i64, scratch_operands = 0 : i64, tpu.core_type = #tpu.core_type<tc>, window_params = [{transform_indices = @transform_0, window_bounds = array<i64: 8, 4>}, {pipeline_mode = #tpu.pipeline_mode<synchronous>, transform_indices = @transform_1, window_bounds = array<i64: 16, 32>}, {transform_indices = @transform_2, window_bounds = array<i64: 8, 128>}]} {
    %c0 = arith.constant 0 : index
    %c0_0 = arith.constant 0 : index
    %0 = vector.load %arg2[%c0, %c0_0] : memref<16x32xf32, #tpu.memory_space<vmem>>, vector<16x32xf32>
    %c0_1 = arith.constant 0 : index
    %c0_2 = arith.constant 0 : index
    %1 = vector.load %arg1[%c0_1, %c0_2] : memref<8x4xi32, #tpu.memory_space<vmem>>, vector<8x4xi32>
    %2 = tpu.iota {dimensions = array<i32: 1>} : vector<8x16xi32>
    %3 = vector.extract_strided_slice %1 {offsets = [0, 0], sizes = [8, 1], strides = [1, 1]} : vector<8x4xi32> to vector<8x1xi32>
    %4 = vector.broadcast %3 : vector<8x1xi32> to vector<8x16xi32>
    %5 = arith.cmpi eq, %2, %4 : vector<8x16xi32>
    %6 = arith.extui %5 : vector<8x16xi1> to vector<8x16xi32>
    %7 = arith.sitofp %6 : vector<8x16xi32> to vector<8x16xf32>
    %cst = arith.constant dense<0.000000e+00> : vector<8x32xf32>
    %8 = tpu.matmul %7, %0, %cst {dimension_numbers = #tpu.dot_dimension_numbers<[1], [0], [0], [1], [0, 0, 1, 1], [], []>} : vector<8x16xf32>, vector<16x32xf32>, vector<8x32xf32> -> vector<8x32xf32>
    %cst_3 = arith.constant 0.000000e+00 : f32
    %9 = vector.broadcast %cst_3 : f32 to vector<8x32xf32>
    %10 = arith.maximumf %8, %9 : vector<8x32xf32>
    %c0_4 = arith.constant 0 : index
    %c0_5 = arith.constant 0 : index
    %11 = vector.load %arg3[%c0_4, %c0_5] : memref<8x128xf32, #tpu.memory_space<vmem>>, vector<8x32xf32>
    tpu.vector_store %arg3[%c0_4, %c0_5], %10 {strides = array<i32>} : memref<8x128xf32, #tpu.memory_space<vmem>>, vector<8x32xf32>,
    %12 = vector.extract_strided_slice %1 {offsets = [0, 1], sizes = [8, 1], strides = [1, 1]} : vector<8x4xi32> to vector<8x1xi32>
    %13 = vector.broadcast %12 : vector<8x1xi32> to vector<8x16xi32>
    %14 = arith.cmpi eq, %2, %13 : vector<8x16xi32>
    %15 = arith.extui %14 : vector<8x16xi1> to vector<8x16xi32>
    %16 = arith.sitofp %15 : vector<8x16xi32> to vector<8x16xf32>
    %cst_6 = arith.constant dense<0.000000e+00> : vector<8x32xf32>
    %17 = tpu.matmul %16, %0, %cst_6 {dimension_numbers = #tpu.dot_dimension_numbers<[1], [0], [0], [1], [0, 0, 1, 1], [], []>} : vector<8x16xf32>, vector<16x32xf32>, vector<8x32xf32> -> vector<8x32xf32>
    %cst_7 = arith.constant 0.000000e+00 : f32
    %18 = vector.broadcast %cst_7 : f32 to vector<8x32xf32>
    %19 = arith.maximumf %17, %18 : vector<8x32xf32>
    %c0_8 = arith.constant 0 : index
    %c32 = arith.constant 32 : index
    %20 = vector.load %arg3[%c0_8, %c32] : memref<8x128xf32, #tpu.memory_space<vmem>>, vector<8x32xf32>
    tpu.vector_store %arg3[%c0_8, %c32], %19 {strides = array<i32>} : memref<8x128xf32, #tpu.memory_space<vmem>>, vector<8x32xf32>,
    %21 = vector.extract_strided_slice %1 {offsets = [0, 2], sizes = [8, 1], strides = [1, 1]} : vector<8x4xi32> to vector<8x1xi32>
    %22 = vector.broadcast %21 : vector<8x1xi32> to vector<8x16xi32>
    %23 = arith.cmpi eq, %2, %22 : vector<8x16xi32>
    %24 = arith.extui %23 : vector<8x16xi1> to vector<8x16xi32>
    %25 = arith.sitofp %24 : vector<8x16xi32> to vector<8x16xf32>
    %cst_9 = arith.constant dense<0.000000e+00> : vector<8x32xf32>
    %26 = tpu.matmul %25, %0, %cst_9 {dimension_numbers = #tpu.dot_dimension_numbers<[1], [0], [0], [1], [0, 0, 1, 1], [], []>} : vector<8x16xf32>, vector<16x32xf32>, vector<8x32xf32> -> vector<8x32xf32>
    %cst_10 = arith.constant 0.000000e+00 : f32
    %27 = vector.broadcast %cst_10 : f32 to vector<8x32xf32>
    %28 = arith.maximumf %26, %27 : vector<8x32xf32>
    %c0_11 = arith.constant 0 : index
    %c64 = arith.constant 64 : index
    %29 = vector.load %arg3[%c0_11, %c64] : memref<8x128xf32, #tpu.memory_space<vmem>>, vector<8x32xf32>
    tpu.vector_store %arg3[%c0_11, %c64], %28 {strides = array<i32>} : memref<8x128xf32, #tpu.memory_space<vmem>>, vector<8x32xf32>,
    %30 = vector.extract_strided_slice %1 {offsets = [0, 3], sizes = [8, 1], strides = [1, 1]} : vector<8x4xi32> to vector<8x1xi32>
    %31 = vector.broadcast %30 : vector<8x1xi32> to vector<8x16xi32>
    %32 = arith.cmpi eq, %2, %31 : vector<8x16xi32>
    %33 = arith.extui %32 : vector<8x16xi1> to vector<8x16xi32>
    %34 = arith.sitofp %33 : vector<8x16xi32> to vector<8x16xf32>
    %cst_12 = arith.constant dense<0.000000e+00> : vector<8x32xf32>
    %35 = tpu.matmul %34, %0, %cst_12 {dimension_numbers = #tpu.dot_dimension_numbers<[1], [0], [0], [1], [0, 0, 1, 1], [], []>} : vector<8x16xf32>, vector<16x32xf32>, vector<8x32xf32> -> vector<8x32xf32>
    %cst_13 = arith.constant 0.000000e+00 : f32
    %36 = vector.broadcast %cst_13 : f32 to vector<8x32xf32>
    %37 = arith.maximumf %35, %36 : vector<8x32xf32>
    %c0_14 = arith.constant 0 : index
    %c96 = arith.constant 96 : index
    %38 = vector.load %arg3[%c0_14, %c96] : memref<8x128xf32, #tpu.memory_space<vmem>>, vector<8x32xf32>
    tpu.vector_store %arg3[%c0_14, %c96], %37 {strides = array<i32>} : memref<8x128xf32, #tpu.memory_space<vmem>>, vector<8x32xf32>,
    return
  }
  func.func @transform_0(%arg0: i32) -> (i32, i32) {
    %c0_i32 = arith.constant 0 : i32
    %c0_i32_0 = arith.constant 0 : i32
    return %arg0, %c0_i32 : i32, i32
  }
  func.func @transform_1(%arg0: i32) -> (i32, i32) {
    %c0_i32 = arith.constant 0 : i32
    %c0_i32_0 = arith.constant 0 : i32
    %c0_i32_1 = arith.constant 0 : i32
    return %c0_i32, %c0_i32_0 : i32, i32
  }
  func.func @transform_2(%arg0: i32) -> (i32, i32) {
    %c0_i32 = arith.constant 0 : i32
    %c0_i32_0 = arith.constant 0 : i32
    return %arg0, %c0_i32 : i32, i32
  }
}

</mosaic_0001>

<bundles_post_ra>
// kernel: tpu_custom_call.1
= control target key start
LH: loop header
LB: loop body
LE: loop exit
PB: predicated region body
PF: predicated region fallthrough
CT: control target
= control target key end

     0   :  { %7 = vsyncpa [#allocation3], 0  ;;  %s303_s0 = inlined_call_operand.vmem [shape: s32[8,4], index: 0, kind: input, shape index: {}]   ;;  %s304_s1 = inlined_call_operand.hbm [shape: f32[16,32], index: 1, kind: input, shape index: {}]   ;;  %s305_s2 = inlined_call_operand.hbm [shape: f32[8,128], index: 2, kind: output, shape index: {}]  }
   0x1   :  { %8 = vsyncpa [#allocation4], 0  ;;  %s15_s11 = sshll.u32 %s304_s1, 4  ;;  %s267_s12 = smov [#allocation2]   ;;  %s16_s11 = int_to_ptr.hbm [resolvable:$true] %s15_s11 }
   0x2   :  { %s17_s13 = sshll.u32 %s267_s12, 4  ;;  %s268_s14 = smov 128   ;;  %s18_s13 = int_to_ptr.vmem [resolvable:$true] %s17_s13 }
   0x3   :  { %s269_s15 = smov 8  }
   0x4   :  { %23 = dma.hbm_to_vmem [thread:$0]  %s16_s11, 256, %s18_s13, [#allocation3], %s268_s14, %s268_s14, %s269_s15  }
   0x5   :  { %263 = dma.done.wait [#allocation3], 256  }
   0x6   :  { %264 = vsyncadd [#allocation3], 4294967040  ;;  %v270_v0 = vmov 2   ;;  %v271_v1 = vmov 1   ;;  %v30_v2 = vld [vmem:[%s303_s0] sm:$0xff]  ;;  %v272_v3 = vmov 3   ;;  %v31_v7 = vlaneseq }
   0x7   :  { %211 = vset.pattern.permute.xlu0 %v270_v0  ;;  %213 = vset.pattern.permute.xlu1 %v271_v1  ;;  %v273_v4 = vmov 0   ;;  %v29_v5 = vld [vmem:[#allocation2 + $0x8] sm:$0xff]  ;;  %v28_v6 = vld [vmem:[#allocation2] sm:$0xff]  ;;  %vm39_vm0 = vcmask 130048   ;;  %v274_v11 = vmov 0.0   ;;  %s275_s0 = smov 32  }
   0x8   :  { %67 = vperm.xlu1 %213, %v30_v2   ;;  %103 = vperm.xlu0 %211, %v30_v2   ;;  %v32_v8 = vand.u32 127, %v31_v7  ;;  %s276_s1 = smov 64   ;;  %s277_s18 = smov 96   ;;  %vm64_vm5 = vcmask 261120   ;;  %vm100_vm6 = vcmask 523520   ;;  %vm136_vm7 = vcmask 785920  }
   0x9   :  { %89 = vmatpush.msra.mxu1 %v29_v5  ;;  %125 = vmatpush.msra.mxu2 %v29_v5  ;;  %s278_s19 = smov [#allocation5]   ;;  %s181_s23 = sshll.u32 %s305_s2, 4  ;;  %vm172_vm8 = vcmask 1048320   ;;  %s182_s23 = int_to_ptr.hbm [resolvable:$true] %s181_s23 }
   0xa   :  { %161 = vmatpush.msra.mxu3 %v29_v5  ;;  %57 = vmatpush.msra.mxu0 %v29_v5  ;;  %s179_s20 = sshll.u32 %s278_s19, 4  ;;  %s180_s20 = int_to_ptr.vmem [resolvable:$true] %s179_s20 }
   0xb   :  { %90 = vmatpush.msra.mxu1 %v28_v6  ;;  %126 = vmatpush.msra.mxu2 %v28_v6 }
   0xc   :  { %162 = vmatpush.msra.mxu3 %v28_v6  ;;  %58 = vmatpush.msra.mxu0 %v28_v6 }
  0x10   :  { %212 = vset.pattern.permute.xlu0 %v272_v3  ;;  %214 = vset.pattern.permute.xlu1 %v273_v4 }
  0x11   :  { %139 = vperm.xlu0 %212, %v30_v2   ;;  %34 = vperm.xlu1 %214, %v30_v2  }
  0x7a   :  { %v68_v9 = vpop.permute.xlu1 %67  ;;  %v104_v10 = vpop.permute.xlu0 %103 }
  0x7b   :  { %vm69_vm1 = vcmp.eq.s32.totalorder %v32_v8, %v68_v9  ;;  %vm105_vm2 = vcmp.eq.s32.totalorder %v32_v8, %v104_v10 }
  0x7c   :  { %v193_v12 = vsel %vm69_vm1, 1.0, %v274_v11  ;;  %v195_v13 = vsel %vm105_vm2, 1.0, %v274_v11 }
  0x7d   :  { %194 = vmatmul.msk.f32.vlgmr.msra.gmra.mxu1 %vm39_vm0, %v193_v12  ;;  %196 = vmatmul.msk.f32.vlgmr.msra.gmra.mxu2 %vm39_vm0, %v195_v13 }
  0x83   :  { %v140_v14 = vpop.permute.xlu0 %139  ;;  %v35_v15 = vpop.permute.xlu1 %34 }
  0x84   :  { %vm141_vm3 = vcmp.eq.s32.totalorder %v32_v8, %v140_v14  ;;  %vm36_vm4 = vcmp.eq.s32.totalorder %v32_v8, %v35_v15 }
  0x85   :  { %v197_v16 = vsel %vm141_vm3, 1.0, %v274_v11  ;;  %v191_v17 = vsel %vm36_vm4, 1.0, %v274_v11 }
  0x86   :  { %198 = vmatmul.msk.f32.vlgmr.msra.gmra.mxu3 %vm39_vm0, %v197_v16  ;;  %192 = vmatmul.msk.f32.vlgmr.msra.gmra.mxu0 %vm39_vm0, %v191_v17 }
  0xfa   :  { %v92_v18 = vpop.f32.mrf.mxu1 }
  0xfb   :  { %v95_v19 = vmax.f32 %v92_v18, 0.0 }
  0xfd   :  { %97 = vrot.lane.b32.xlu2 %v95_v19, %s275_s0 }
 0x100   :  { %v128_v20 = vpop.f32.mrf.mxu2 }
 0x101   :  { %v131_v21 = vmax.f32 %v128_v20, 0.0 }
 0x103   :  { %v60_v24 = vpop.f32.mrf.mxu0 }
 0x104   :  { %v63_v25 = vmax.f32 %v60_v24, 0.0 }
 0x105   :  { %133 = vrot.lane.b32.xlu2 %v131_v21, %s276_s1 }
 0x106   :  { %65 = vst.msk [vmem:[#allocation5] sm:$0xff] %vm64_vm5, %v63_v25 }
 0x109   :  { %v164_v22 = vpop.f32.mrf.mxu3 }
 0x10a   :  { %v167_v23 = vmax.f32 %v164_v22, 0.0 }
 0x10c   :  { %169 = vrot.lane.b32.xlu1 %v167_v23, %s277_s18 }
 0x157   :  { %v98_v26 = vpop.permute.xlu2 %97 }
 0x158   :  { %101 = vst.msk [vmem:[#allocation5] sm:$0xff] %vm100_vm6, %v98_v26 }
 0x15f   :  { %v134_v27 = vpop.permute.xlu2 %133 }
 0x160   :  { %137 = vst.msk [vmem:[#allocation5] sm:$0xff] %vm136_vm7, %v134_v27 }
 0x17e   :  { %v170_v28 = vpop.permute.xlu1 %169 }
 0x17f   :  { %173 = vst.msk [vmem:[#allocation5] sm:$0xff] %vm172_vm8, %v170_v28 }
 0x180   :  { %184 = dma.vmem_to_hbm [thread:$0]  %s180_s20, 128, %s182_s23, [#allocation4]  }
 0x181   :  { %265 = dma.done.wait [#allocation4], 128  }
 0x182   :  { %266 = vsyncadd [#allocation4], 4294967168 }
 0x183   :  { %189 = vsyncpa [#allocation3], 1 }
 0x184   :  { %190 = vsyncpa [#allocation4], 1 }

</bundles_post_ra>
